<compile_context>
chip_gen: v7x
topology: tpu7x:2x2x1
jax: 0.10.0
libtpu: 0.0.40
codegen_flags: <defaults>
</compile_context>

<pallas_src>
import jax
import jax.numpy as jnp
from jax.experimental import pallas as pl
from jax.experimental.pallas import tpu as pltpu

HIDDEN_DIM = 64
INPUT_DIM = 10
STEP_SIZE = 0.01

_SUBLANE = 8
_MAX_TILE_B = 2048          # rows per grid step (streaming, mem-bound)
_PALLAS_MIN_ELEMENTS = 1 << 20   # below this, plain fused XLA is faster


def _leapfrog_kernel(y_ref, v_ref, g_ref, y_out_ref, v_out_ref):
    """All refs: (TILE_B, D). Exact PyTorch op ordering (two half-kicks)."""
    half_kick = (0.5 * STEP_SIZE) * g_ref[...]
    v_half = v_ref[...] - half_kick
    y_out_ref[...] = y_ref[...] + STEP_SIZE * v_half
    v_out_ref[...] = v_half - half_kick


def _decoder_forward_pallas(y, v, energy_grad):
    B, D = y.shape
    dtype = y.dtype

    # Pad batch only to a multiple of 8 sublanes; keep the natural last dim.
    b8 = pl.cdiv(B, _SUBLANE) * _SUBLANE
    if b8 <= 2 * _SUBLANE:
        tile_b = b8                                   # single tiny tile
    else:
        # >=2 grid steps (lets v7x shard the batch axis over its 2 TCs),
        # capped so per-step overhead stays amortized.
        tile_b = min(_MAX_TILE_B, pl.cdiv(b8, 2 * _SUBLANE) * _SUBLANE)
    b_pad = pl.cdiv(b8, tile_b) * tile_b

    def _pad(x):
        if b_pad == B:
            return x
        return jnp.pad(x, ((0, b_pad - B), (0, 0)))

    y_p, v_p, g_p = _pad(y), _pad(v), _pad(energy_grad)

    spec = pl.BlockSpec((tile_b, D), lambda i: (i, 0))  # last dim == full D: legal
    grid = (b_pad // tile_b,)

    itemsize = jnp.dtype(dtype).itemsize
    cost = pl.CostEstimate(
        flops=5 * b_pad * D,
        transcendentals=0,
        bytes_accessed=5 * b_pad * D * itemsize,   # read y,v,g ; write y,v
    )

    y_out, v_out = pl.pallas_call(
        _leapfrog_kernel,
        grid=grid,
        in_specs=[spec, spec, spec],
        out_specs=[spec, spec],
        out_shape=[
            jax.ShapeDtypeStruct((b_pad, D), dtype),
            jax.ShapeDtypeStruct((b_pad, D), dtype),
        ],
        # y->y_out, v->v_out reuse; becomes a true in-place update when the
        # caller donates y/v at the jit boundary (donate_argnums=(0, 1)).
        input_output_aliases={0: 0, 1: 1},
        cost_estimate=cost,
        compiler_params=pltpu.CompilerParams(
            dimension_semantics=("parallel",),
            vmem_limit_bytes=32 * 1024 * 1024,
        ),
    )(y_p, v_p, g_p)

    if b_pad != B:
        y_out = y_out[:B]
        v_out = v_out[:B]
    return y_out, v_out


def decoder_forward(y, v, energy_grad, force_pallas=False):
    """Pallas implementation of Decoder.forward(y, v, energy_grad) -> (y, v)."""
    assert y.shape == v.shape == energy_grad.shape
    B, D = y.shape

    if not force_pallas and B * D < _PALLAS_MIN_ELEMENTS:
        # Tiny inputs: three fused elementwise XLA ops beat any kernel launch.
        half_kick = (0.5 * STEP_SIZE) * energy_grad
        v_half = v - half_kick
        y_new = y + STEP_SIZE * v_half
        return y_new, v_half - half_kick

    return _decoder_forward_pallas(y, v, energy_grad)


def init_decoder_params(key, input_dim=INPUT_DIM, hidden_dim=HIDDEN_DIM):
    """Deterministic init mirroring nn.Linear shapes in Decoder.__init__.

    (Unused by forward — kept only for structural fidelity with the module.)
    """
    def linear(k, fan_in, fan_out):
        kw, kb = jax.random.split(k)
        bound = 1.0 / jnp.sqrt(fan_in)
        w = jax.random.uniform(kw, (fan_out, fan_in), jnp.float32, -bound, bound)
        b = jax.random.uniform(kb, (fan_out,), jnp.float32, -bound, bound)
        return w, b

    k1, k2, k3, k4 = jax.random.split(key, 4)
    return {
        "qv": (linear(k1, input_dim, hidden_dim), linear(k2, hidden_dim, input_dim)),
        "tv": (linear(k3, input_dim, hidden_dim), linear(k4, hidden_dim, input_dim)),
    }


if __name__ == "__main__":
    key = jax.random.PRNGKey(0)
    k_y, k_v, k_g, k_params = jax.random.split(key, 4)

    batch = 8
    y = jax.random.normal(k_y, (batch, INPUT_DIM), jnp.float32)
    v = jax.random.normal(k_v, (batch, INPUT_DIM), jnp.float32)
    energy_grad = jax.random.normal(k_g, (batch, INPUT_DIM), jnp.float32)

    _params = init_decoder_params(k_params)  # dead code in forward (matches PyTorch)

    # Reference: same op ordering as the PyTorch forward.
    v_half_ref = v - 0.5 * STEP_SIZE * energy_grad
    y_ref = y + STEP_SIZE * v_half_ref
    v_ref = v_half_ref - 0.5 * STEP_SIZE * energy_grad

    fwd = jax.jit(decoder_forward, static_argnames=("force_pallas",))

    # 1) Force the Pallas path so the kernel actually compiles & runs on TPU.
    y_out, v_out = fwd(y, v, energy_grad, force_pallas=True)
    jax.block_until_ready((y_out, v_out))
    assert y_out.shape == y.shape and v_out.shape == v.shape
    assert jnp.allclose(y_out, y_ref, atol=1e-7, rtol=1e-7)
    assert jnp.allclose(v_out, v_ref, atol=1e-7, rtol=1e-7)

    # 2) Auto path (tiny input -> fused plain-XLA fallback) must match too.
    y_out2, v_out2 = fwd(y, v, energy_grad)
    jax.block_until_ready((y_out2, v_out2))
    assert jnp.allclose(y_out2, y_ref, atol=1e-7, rtol=1e-7)
    assert jnp.allclose(v_out2, v_ref, atol=1e-7, rtol=1e-7)

    print("KERNEL_OK")
</pallas_src>

<mosaic_0001>
module attributes {stable_mosaic.version = 11 : i64} {
  func.func @_leapfrog_kernel(%arg0: i32, %arg1: memref<8x10xf32, #tpu.memory_space<vmem>>, %arg2: memref<8x10xf32, #tpu.memory_space<vmem>>, %arg3: memref<8x10xf32, #tpu.memory_space<vmem>>, %arg4: memref<8x10xf32, #tpu.memory_space<vmem>>, %arg5: memref<8x10xf32, #tpu.memory_space<vmem>>) attributes {dimension_semantics = [#tpu.dimension_semantics<parallel>], iteration_bounds = array<i64: 1>, scalar_prefetch = 0 : i64, scratch_operands = 0 : i64, tpu.core_type = #tpu.core_type<tc>, window_params = [{transform_indices = @transform_0, window_bounds = array<i64: 8, 10>}, {transform_indices = @transform_1, window_bounds = array<i64: 8, 10>}, {transform_indices = @transform_2, window_bounds = array<i64: 8, 10>}, {transform_indices = @transform_3, window_bounds = array<i64: 8, 10>}, {transform_indices = @transform_4, window_bounds = array<i64: 8, 10>}]} {
    %c0 = arith.constant 0 : index
    %c0_0 = arith.constant 0 : index
    %0 = vector.load %arg3[%c0, %c0_0] : memref<8x10xf32, #tpu.memory_space<vmem>>, vector<8x10xf32>
    %cst = arith.constant 5.000000e-03 : f32
    %1 = vector.broadcast %cst : f32 to vector<8x10xf32>
    %2 = arith.mulf %1, %0 : vector<8x10xf32>
    %c0_1 = arith.constant 0 : index
    %c0_2 = arith.constant 0 : index
    %3 = vector.load %arg2[%c0_1, %c0_2] : memref<8x10xf32, #tpu.memory_space<vmem>>, vector<8x10xf32>
    %4 = arith.subf %3, %2 : vector<8x10xf32>
    %c0_3 = arith.constant 0 : index
    %c0_4 = arith.constant 0 : index
    %5 = vector.load %arg1[%c0_3, %c0_4] : memref<8x10xf32, #tpu.memory_space<vmem>>, vector<8x10xf32>
    %cst_5 = arith.constant 0.00999999977 : f32
    %6 = vector.broadcast %cst_5 : f32 to vector<8x10xf32>
    %7 = arith.mulf %6, %4 : vector<8x10xf32>
    %8 = arith.addf %5, %7 : vector<8x10xf32>
    %c0_6 = arith.constant 0 : index
    %c0_7 = arith.constant 0 : index
    %9 = vector.load %arg4[%c0_6, %c0_7] : memref<8x10xf32, #tpu.memory_space<vmem>>, vector<8x10xf32>
    tpu.vector_store %arg4[%c0_6, %c0_7], %8 {strides = array<i32>} : memref<8x10xf32, #tpu.memory_space<vmem>>, vector<8x10xf32>,
    %10 = arith.subf %4, %2 : vector<8x10xf32>
    %c0_8 = arith.constant 0 : index
    %c0_9 = arith.constant 0 : index
    %11 = vector.load %arg5[%c0_8, %c0_9] : memref<8x10xf32, #tpu.memory_space<vmem>>, vector<8x10xf32>
    tpu.vector_store %arg5[%c0_8, %c0_9], %10 {strides = array<i32>} : memref<8x10xf32, #tpu.memory_space<vmem>>, vector<8x10xf32>,
    return
  }
  func.func @transform_0(%arg0: i32) -> (i32, i32) {
    %c0_i32 = arith.constant 0 : i32
    %c0_i32_0 = arith.constant 0 : i32
    return %arg0, %c0_i32 : i32, i32
  }
  func.func @transform_1(%arg0: i32) -> (i32, i32) {
    %c0_i32 = arith.constant 0 : i32
    %c0_i32_0 = arith.constant 0 : i32
    return %arg0, %c0_i32 : i32, i32
  }
  func.func @transform_2(%arg0: i32) -> (i32, i32) {
    %c0_i32 = arith.constant 0 : i32
    %c0_i32_0 = arith.constant 0 : i32
    return %arg0, %c0_i32 : i32, i32
  }
  func.func @transform_3(%arg0: i32) -> (i32, i32) {
    %c0_i32 = arith.constant 0 : i32
    %c0_i32_0 = arith.constant 0 : i32
    return %arg0, %c0_i32 : i32, i32
  }
  func.func @transform_4(%arg0: i32) -> (i32, i32) {
    %c0_i32 = arith.constant 0 : i32
    %c0_i32_0 = arith.constant 0 : i32
    return %arg0, %c0_i32 : i32, i32
  }
}

</mosaic_0001>

<bundles_post_ra>
// kernel: decoder_forward.1
= control target key start
LH: loop header
LB: loop body
LE: loop exit
PB: predicated region body
PF: predicated region fallthrough
CT: control target
= control target key end

     0   :  { %10 = vsyncpa [#allocation3], 0  ;;  %s265_s0 = inlined_call_operand.hbm [shape: f32[8,10], index: 0, kind: input, shape index: {}, may-alias: {0,3}]   ;;  %s266_s1 = inlined_call_operand.hbm [shape: f32[8,10], index: 1, kind: input, shape index: {}, may-alias: {1,4}]   ;;  %s267_s2 = inlined_call_operand.vmem [shape: f32[8,10], index: 2, kind: input, shape index: {}]   ;;  %s268_s3 = inlined_call_operand.hbm [shape: f32[8,10], index: 3, kind: output, shape index: {0}, may-alias: {0,3}]   ;;  %s269_s4 = inlined_call_operand.hbm [shape: f32[8,10], index: 4, kind: output, shape index: {1}, may-alias: {1,4}]  }
   0x1   :  { %11 = vsyncpa [#allocation6], 0 }
   0x2   :  { %12 = vsyncpa [#allocation4], 0 }
   0x3   :  { %13 = vsyncpa [#allocation9], 0  ;;  %s183_s15 = smov [#allocation2]   ;;  %s184_s17 = smov [#allocation5]  }
   0x4   :  { %s20_s16 = sshll.u32 %s183_s15, 4  ;;  %s30_s18 = sshll.u32 %s184_s17, 4  ;;  %s21_s16 = int_to_ptr.vmem [resolvable:$true] %s20_s16  ;;  %s31_s18 = int_to_ptr.vmem [resolvable:$true] %s30_s18 }
   0x5   :  { %s87_s21 = scalar_lea.hbm %s265_s0, 128 }
   0x6   :  { %p88_p0 = scmp.ne.s32.totalorder %s265_s0, %s87_s21  ;;  %p91_p1 = scmp.lt.u32.totalorder %s87_s21, %s265_s0 }
   0x8   :  { %p93_p2 = pnand %p91_p1, %p88_p0 }
   0xa   :  { %96 = shalt.err (!%p93_p2)
}
   0xb   :  { %s97_s26 = scalar_lea.vmem %s21_s16, 128  ;;  %p102_p4 = scmp.lt.s32.totalorder %s21_s16, %s21_s16 }
   0xc   :  { %p98_p3 = scmp.ne.s32.totalorder %s21_s16, %s97_s26  ;;  %p103_p5 = scmp.lt.s32.totalorder %s97_s26, %s97_s26 }
   0xe   :  { %p104_p6 = por %p103_p5, %p102_p4 }
  0x10   :  { %p105_p7 = pnand %p104_p6, %p98_p3 }
  0x12   :  { %108 = shalt.err (!%p105_p7)
}
  0x13   :  { %23 = dma.hbm_to_vmem [thread:$0]  %s265_s0, 128, %s21_s16, [#allocation3]  }
  0x14   :  { %s109_s5 = scalar_lea.hbm %s266_s1, 128 }
  0x15   :  { %p110_p8 = scmp.ne.s32.totalorder %s266_s1, %s109_s5  ;;  %p113_p9 = scmp.lt.u32.totalorder %s109_s5, %s266_s1 }
  0x17   :  { %p115_p10 = pnand %p113_p9, %p110_p8 }
  0x19   :  { %118 = shalt.err (!%p115_p10)
}
  0x1a   :  { %s119_s10 = scalar_lea.vmem %s31_s18, 128  ;;  %p124_p12 = scmp.lt.s32.totalorder %s31_s18, %s31_s18 }
  0x1b   :  { %p120_p11 = scmp.ne.s32.totalorder %s31_s18, %s119_s10  ;;  %p125_p13 = scmp.lt.s32.totalorder %s119_s10, %s119_s10 }
  0x1d   :  { %p126_p0 = por %p125_p13, %p124_p12 }
  0x1f   :  { %p127_p1 = pnand %p126_p0, %p120_p11 }
  0x21   :  { %130 = shalt.err (!%p127_p1)
}
  0x22   :  { %33 = dma.hbm_to_vmem [thread:$0]  %s266_s1, 128, %s31_s18, [#allocation6]  }
  0x23   :  { %175 = dma.done.wait [#allocation3], 128  }
  0x24   :  { %176 = vsyncadd [#allocation3], 4294967168 }
  0x25   :  { %177 = dma.done.wait [#allocation6], 128  }
  0x26   :  { %178 = vsyncadd [#allocation6], 4294967168  ;;  %v42_v0 = vld [vmem:[%s267_s2] sm:$0xff]  ;;  %v44_v1 = vld [vmem:[#allocation5] sm:$0xff]  ;;  %s185_s14 = smov [#allocation8]   ;;  %vm49_vm0 = vcmask 80896  }
  0x27   :  { %v43_v2 = vmul.f32 0.005, %v42_v0  ;;  %s69_s15 = sshll.u32 %s185_s14, 4  ;;  %v46_v4 = vld [vmem:[#allocation2] sm:$0xff]  ;;  %s186_s16 = smov [#allocation7]   ;;  %s70_s15 = int_to_ptr.vmem [resolvable:$true] %s69_s15 }
  0x28   :  { %s59_s17 = sshll.u32 %s186_s16, 4  ;;  %s131_s1 = scalar_lea.vmem %s70_s15, 128  ;;  %s60_s17 = int_to_ptr.vmem [resolvable:$true] %s59_s17 }
  0x29   :  { %v45_v3 = vsub.f32 %v44_v1, %v43_v2  ;;  %p132_p2 = scmp.ne.s32.totalorder %s70_s15, %s131_s1  ;;  %p136_p3 = scmp.lt.s32.totalorder %s70_s15, %s70_s15 }
  0x2a   :  { %p137_p4 = scmp.lt.s32.totalorder %s131_s1, %s131_s1 }
  0x2b   :  { %v47_v5 = vmul.f32 0.01, %v45_v3  ;;  %v51_v6 = vsub.f32 %v45_v3, %v43_v2 }
  0x2c   :  { %p138_p5 = por %p137_p4, %p136_p3 }
  0x2d   :  { %v48_v7 = vadd.f32 %v47_v5, %v46_v4  ;;  %52 = vst.msk [vmem:[#allocation8] sm:$0xff] %vm49_vm0, %v51_v6 }
  0x2e   :  { %p139_p6 = pnand %p138_p5, %p132_p2 }
  0x30   :  { %142 = shalt.err (!%p139_p6)
}
  0x31   :  { %s143_s19 = scalar_lea.hbm %s269_s4, 128 }
  0x32   :  { %p144_p7 = scmp.ne.s32.totalorder %s269_s4, %s143_s19  ;;  %p147_p8 = scmp.lt.u32.totalorder %s143_s19, %s269_s4 }
  0x34   :  { %p149_p9 = pnand %p147_p8, %p144_p7 }
  0x36   :  { %152 = shalt.err (!%p149_p9)
}
  0x37   :  { %72 = dma.vmem_to_hbm [thread:$0]  %s70_s15, 128, %s269_s4, [#allocation9]   ;;  %50 = vst.msk [vmem:[#allocation7] sm:$0xff] %vm49_vm0, %v48_v7 }
  0x38   :  { %s153_s26 = scalar_lea.vmem %s60_s17, 128  ;;  %p158_p11 = scmp.lt.s32.totalorder %s60_s17, %s60_s17 }
  0x39   :  { %p154_p10 = scmp.ne.s32.totalorder %s60_s17, %s153_s26  ;;  %p159_p12 = scmp.lt.s32.totalorder %s153_s26, %s153_s26 }
  0x3b   :  { %p160_p13 = por %p159_p12, %p158_p11 }
  0x3d   :  { %p161_p0 = pnand %p160_p13, %p154_p10 }
  0x3f   :  { %164 = shalt.err (!%p161_p0)
}
  0x40   :  { %s165_s29 = scalar_lea.hbm %s268_s3, 128 }
  0x41   :  { %p166_p1 = scmp.ne.s32.totalorder %s268_s3, %s165_s29  ;;  %p169_p2 = scmp.lt.u32.totalorder %s165_s29, %s268_s3 }
  0x43   :  { %p171_p3 = pnand %p169_p2, %p166_p1 }
  0x45   :  { %174 = shalt.err (!%p171_p3)
}
  0x46   :  { %62 = dma.vmem_to_hbm [thread:$0]  %s60_s17, 128, %s268_s3, [#allocation4]  }
  0x47   :  { %179 = dma.done.wait [#allocation4], 128  }
  0x48   :  { %180 = vsyncadd [#allocation4], 4294967168 }
  0x49   :  { %181 = dma.done.wait [#allocation9], 128  }
  0x4a   :  { %182 = vsyncadd [#allocation9], 4294967168 }
  0x4b   :  { %79 = vsyncpa [#allocation3], 1 }
  0x4c   :  { %80 = vsyncpa [#allocation6], 1 }
  0x4d   :  { %81 = vsyncpa [#allocation4], 1 }
  0x4e   :  { %82 = vsyncpa [#allocation9], 1 }

</bundles_post_ra>
